<compile_context>
chip_gen: v7x
topology: tpu7x:2x2x1
jax: 0.10.0
libtpu: 0.0.40
codegen_flags: <defaults>
</compile_context>

<pallas_src>
import functools

import jax
import jax.numpy as jnp
from jax import lax
from jax.experimental import pallas as pl
from jax.experimental.pallas import tpu as pltpu


def _num_tensorcores() -> int:
    """Best-effort TensorCores per chip (v7x and megacore chips have 2)."""
    try:
        kind = jax.devices()[0].device_kind.lower()
    except Exception:
        return 1
    return 2 if any(tag in kind for tag in ("v7", "v4", "v5p")) else 1


def _charbonnier_kernel(x_ref, y_ref, sum_ref, acc_ref, *, eps, tm, tn, rows,
                        steps, need_mask):
    """Grid = (cores, steps).  Each step reduces its (tm, tn) block along rows
    into a (1, tn) partial, accumulated across the 'arbitrary' step axis; a
    single cross-lane reduce produces the per-core scalar on the last step."""
    c = pl.program_id(0)   # TensorCore-split axis ("parallel")
    i = pl.program_id(1)   # reduction axis ("arbitrary", innermost)

    d = x_ref[...].astype(jnp.float32) - y_ref[...].astype(jnp.float32)
    v = jnp.sqrt(d * d + jnp.float32(eps))            # (tm, tn) f32

    def _accum(vals):
        # Intra-step reduction keeps the cross-step accumulator at (1, tn):
        # no full-block acc load/store per step (vld/vst slot budget + VMEM).
        part = jnp.sum(vals, axis=0, keepdims=True)   # (1, tn)

        @pl.when(i == 0)
        def _():
            acc_ref[...] = part        # direct store: skip zero-fill pass

        @pl.when(i > 0)
        def _():
            acc_ref[...] += part

    if need_mask:
        row0 = (c * steps + i) * tm    # first *logical* row of this block
        full = row0 + tm <= rows       # whole block inside the valid rows?

        @pl.when(full)
        def _():
            _accum(v)

        @pl.when(jnp.logical_not(full))
        def _():
            # Edge / duplicated block: rows past the valid range hold undefined
            # VMEM data; mask with a select (safe even for NaN garbage).
            rid = row0 + lax.broadcasted_iota(jnp.int32, (tm, tn), 0)
            _accum(jnp.where(rid < rows, v, jnp.float32(0.0)))
    else:
        _accum(v)

    @pl.when(i == pl.num_programs(1) - 1)
    def _():
        sum_ref[0, 0] = jnp.sum(acc_ref[...])


def charbonnier_loss(x, y, eps=1e-6):
    """Pallas TPU implementation of CharbonnierLoss.forward(x, y)."""
    assert x.shape == y.shape, (x.shape, y.shape)
    # Keep narrow float dtypes narrow (cast happens in-kernel, halving HBM
    # traffic); ints / mismatched dtypes are promoted to f32 in the wrapper.
    if (x.dtype != y.dtype) or not jnp.issubdtype(x.dtype, jnp.floating):
        x = x.astype(jnp.float32)
        y = y.astype(jnp.float32)

    n = x.size
    if n == 0:
        return jnp.float32(jnp.nan)    # torch.mean of an empty tensor is nan

    xf = x.reshape(-1)
    yf = y.reshape(-1)

    itemsize = jnp.dtype(x.dtype).itemsize
    tn = 512 if n >= 512 else 128

    # Only lane-granularity padding (< tn elements).  For n % tn == 0 (the
    # common case for image tensors) this is a no-op and NO HBM copy happens;
    # partial row-blocks are handled by in-kernel masking instead of padding.
    lane_pad = (-n) % tn
    if lane_pad:
        # TODO(synk): jnp.pad still copies the whole tensor when n % tn != 0;
        # a flat-index in-kernel mask would remove even this rare copy.
        xf = jnp.pad(xf, (0, lane_pad))
        yf = jnp.pad(yf, (0, lane_pad))
    rows = (n + lane_pad) // tn
    x2d = xf.reshape(rows, tn)
    y2d = yf.reshape(rows, tn)

    # ~4 MiB per input per grid step (2048x512 f32 / 4096x512 bf16): amortizes
    # the ~0.35us per-step overhead even at v7x HBM bandwidth, while
    # 2 inputs x 2 pipeline buffers (~16 MiB) fit comfortably in v7x VMEM.
    target_bytes = 4 * 1024 * 1024
    tm_big = max(8, target_bytes // (tn * itemsize))
    tm = rows if rows <= tm_big else tm_big   # full-extent block is always legal

    nblocks = (rows + tm - 1) // tm
    # Split blocks across both TensorCores on multi-core chips regardless of
    # block-count parity; a duplicated tail block is fully masked in-kernel.
    nc = 2 if (_num_tensorcores() >= 2 and nblocks >= 2) else 1
    steps = (nblocks + nc - 1) // nc
    grid = (nc, steps)
    need_mask = (nblocks * tm != rows) or (nc * steps != nblocks)

    def in_map(c, i):
        # Clamp duplicated tail blocks to the last valid block (masked anyway).
        return (jnp.minimum(c * steps + i, nblocks - 1), 0)

    in_spec = pl.BlockSpec((tm, tn), in_map)

    cost = pl.CostEstimate(
        flops=5 * n,            # sub, mul, add(+eps), row-reduce add, acc add
        transcendentals=n,      # sqrt
        bytes_accessed=2 * n * itemsize + 4 * nc,
    )

    kernel = pl.pallas_call(
        functools.partial(
            _charbonnier_kernel,
            eps=eps, tm=tm, tn=tn, rows=rows, steps=steps, need_mask=need_mask,
        ),
        out_shape=jax.ShapeDtypeStruct((nc, 1), jnp.float32),
        grid_spec=pltpu.PrefetchScalarGridSpec(
            num_scalar_prefetch=0,
            grid=grid,
            in_specs=[in_spec, in_spec],
            out_specs=pl.BlockSpec(
                (1, 1), lambda c, i: (c, 0), memory_space=pltpu.SMEM
            ),
            scratch_shapes=[pltpu.VMEM((1, tn), jnp.float32)],
        ),
        compiler_params=pltpu.CompilerParams(
            # TODO(synk): confirm with a trace that "parallel" shards the nc
            # axis across v7x TensorCores; switch to pltpu.CORE_PARALLEL if not.
            dimension_semantics=("parallel", "arbitrary"),
            vmem_limit_bytes=48 * 1024 * 1024,
        ),
        cost_estimate=cost,
    )

    partials = kernel(x2d, y2d)            # (nc, 1) per-core partial sums
    total = jnp.sum(partials)
    # Zero lane-padding contributes exactly sqrt(0 + eps) per padded element
    # (both tensors padded with zeros) -- remove it analytically.
    if lane_pad:
        total = total - jnp.float32(lane_pad) * jnp.sqrt(jnp.float32(eps))
    return total / jnp.float32(n)


def charbonnier_loss_ref(x, y, eps=1e-6):
    xf = x.astype(jnp.float32)
    yf = y.astype(jnp.float32)
    return jnp.mean(jnp.sqrt((xf - yf) ** 2 + eps))


if __name__ == "__main__":
    key = jax.random.PRNGKey(0)
    kx, ky = jax.random.split(key)

    # Small NCHW input consistent with an image-fusion loss.
    x = jax.random.normal(kx, (2, 4, 16, 16), dtype=jnp.float32)
    y = jax.random.normal(ky, (2, 4, 16, 16), dtype=jnp.float32)
    out = jax.block_until_ready(charbonnier_loss(x, y))
    ref = jax.block_until_ready(charbonnier_loss_ref(x, y))
    assert jnp.allclose(out, ref, rtol=1e-4, atol=1e-6), (out, ref)

    # Narrow-dtype path (bf16 inputs stay bf16 through HBM, cast in-kernel).
    xh = x.astype(jnp.bfloat16)
    yh = y.astype(jnp.bfloat16)
    out_h = jax.block_until_ready(charbonnier_loss(xh, yh))
    ref_h = jax.block_until_ready(charbonnier_loss_ref(xh, yh))
    assert jnp.allclose(out_h, ref_h, rtol=1e-3, atol=1e-3), (out_h, ref_h)

    # Lane-unaligned shape (n % 512 != 0): exercises pad + analytic correction.
    xu = jax.random.normal(kx, (2, 3, 17, 19), dtype=jnp.float32)
    yu = jax.random.normal(ky, (2, 3, 17, 19), dtype=jnp.float32)
    out_u = jax.block_until_ready(charbonnier_loss(xu, yu))
    ref_u = jax.block_until_ready(charbonnier_loss_ref(xu, yu))
    assert jnp.allclose(out_u, ref_u, rtol=1e-4, atol=1e-6), (out_u, ref_u)

    # Multi-block path with a partial (row-masked) last block and, on
    # multi-TC chips, the 2-core split: rows = 2304 > tm = 2048, no padding.
    xb = jax.random.normal(kx, (2, 4, 384, 384), dtype=jnp.float32)
    yb = jax.random.normal(ky, (2, 4, 384, 384), dtype=jnp.float32)
    out_b = jax.block_until_ready(charbonnier_loss(xb, yb))
    ref_b = jax.block_until_ready(charbonnier_loss_ref(xb, yb))
    assert jnp.allclose(out_b, ref_b, rtol=5e-4, atol=1e-5), (out_b, ref_b)

    print("KERNEL_OK")
</pallas_src>

<mosaic_0001>
module attributes {stable_mosaic.version = 11 : i64} {
  func.func @_charbonnier_kernel(%arg0: i32, %arg1: i32, %arg2: memref<4x512xf32, #tpu.memory_space<vmem>>, %arg3: memref<4x512xf32, #tpu.memory_space<vmem>>, %arg4: memref<1x1xf32, #tpu.memory_space<smem>>, %arg5: memref<1x512xf32, #tpu.memory_space<vmem>>) attributes {dimension_semantics = [#tpu.dimension_semantics<parallel>, #tpu.dimension_semantics<arbitrary>], iteration_bounds = array<i64: 1, 1>, scalar_prefetch = 0 : i64, scratch_operands = 1 : i64, tpu.core_type = #tpu.core_type<tc>, window_params = [{transform_indices = @transform_0, window_bounds = array<i64: 4, 512>}, {transform_indices = @transform_1, window_bounds = array<i64: 4, 512>}, {transform_indices = @transform_2, window_bounds = array<i64: 1, 1>}]} {
    %c0 = arith.constant 0 : index
    %c0_0 = arith.constant 0 : index
    %0 = vector.load %arg2[%c0, %c0_0] : memref<4x512xf32, #tpu.memory_space<vmem>>, vector<4x512xf32>
    %c0_1 = arith.constant 0 : index
    %c0_2 = arith.constant 0 : index
    %1 = vector.load %arg3[%c0_1, %c0_2] : memref<4x512xf32, #tpu.memory_space<vmem>>, vector<4x512xf32>
    %2 = arith.subf %0, %1 : vector<4x512xf32>
    %3 = arith.mulf %2, %2 : vector<4x512xf32>
    %cst = arith.constant 9.99999997E-7 : f32
    %4 = vector.broadcast %cst : f32 to vector<4x512xf32>
    %5 = arith.addf %3, %4 : vector<4x512xf32>
    %6 = math.sqrt %5 : vector<4x512xf32>
    %cst_3 = arith.constant dense<0.000000e+00> : vector<512xf32>
    %7 = vector.multi_reduction <add>, %6, %cst_3 [0] : vector<4x512xf32> to vector<512xf32>
    %8 = vector.shape_cast %7 : vector<512xf32> to vector<1x512xf32>
    %c0_i32 = arith.constant 0 : i32
    %9 = arith.cmpi eq, %arg1, %c0_i32 : i32
    %10 = arith.extui %9 : i1 to i32
    %c0_i32_4 = arith.constant 0 : i32
    %11 = arith.cmpi ne, %10, %c0_i32_4 : i32
    scf.if %11 {
      %c0_9 = arith.constant 0 : index
      %c0_10 = arith.constant 0 : index
      %18 = vector.load %arg5[%c0_9, %c0_10] : memref<1x512xf32, #tpu.memory_space<vmem>>, vector<1x512xf32>
      tpu.vector_store %arg5[%c0_9, %c0_10], %8 {strides = array<i32>} : memref<1x512xf32, #tpu.memory_space<vmem>>, vector<1x512xf32>,
    } else {
    }
    %c0_i32_5 = arith.constant 0 : i32
    %12 = arith.cmpi sgt, %arg1, %c0_i32_5 : i32
    %13 = arith.extui %12 : i1 to i32
    %c0_i32_6 = arith.constant 0 : i32
    %14 = arith.cmpi ne, %13, %c0_i32_6 : i32
    scf.if %14 {
      %c0_9 = arith.constant 0 : index
      %c0_10 = arith.constant 0 : index
      %18 = vector.load %arg5[%c0_9, %c0_10] : memref<1x512xf32, #tpu.memory_space<vmem>>, vector<1x512xf32>
      %19 = arith.addf %18, %8 : vector<1x512xf32>
      %c0_11 = arith.constant 0 : index
      %c0_12 = arith.constant 0 : index
      %20 = vector.load %arg5[%c0_11, %c0_12] : memref<1x512xf32, #tpu.memory_space<vmem>>, vector<1x512xf32>
      tpu.vector_store %arg5[%c0_11, %c0_12], %19 {strides = array<i32>} : memref<1x512xf32, #tpu.memory_space<vmem>>, vector<1x512xf32>,
    } else {
    }
    %c0_i32_7 = arith.constant 0 : i32
    %15 = arith.cmpi eq, %arg1, %c0_i32_7 : i32
    %16 = arith.extui %15 : i1 to i32
    %c0_i32_8 = arith.constant 0 : i32
    %17 = arith.cmpi ne, %16, %c0_i32_8 : i32
    scf.if %17 {
      %c0_9 = arith.constant 0 : index
      %c0_10 = arith.constant 0 : index
      %18 = vector.load %arg5[%c0_9, %c0_10] : memref<1x512xf32, #tpu.memory_space<vmem>>, vector<1x512xf32>
      %19 = vector.shape_cast %18 : vector<1x512xf32> to vector<1x1x512xf32>
      %cst_11 = arith.constant dense<0.000000e+00> : vector<1xf32>
      %20 = vector.multi_reduction <add>, %19, %cst_11 [1, 2] : vector<1x1x512xf32> to vector<1xf32>
      %21 = vector.shape_cast %20 : vector<1xf32> to vector<1x1x1xf32>
      %22 = vector.extract %21[0, 0, 0] : f32 from vector<1x1x1xf32>
      %c0_12 = arith.constant 0 : index
      %c0_13 = arith.constant 0 : index
      %23 = memref.load %arg4[%c0_12, %c0_13] : memref<1x1xf32, #tpu.memory_space<smem>>
      memref.store %22, %arg4[%c0_12, %c0_13] : memref<1x1xf32, #tpu.memory_space<smem>>
    } else {
    }
    return
  }
  func.func @transform_0(%arg0: i32, %arg1: i32) -> (i32, i32) {
    %c1_i32 = arith.constant 1 : i32
    %0 = arith.muli %arg0, %c1_i32 : i32
    %1 = arith.addi %0, %arg1 : i32
    %c0_i32 = arith.constant 0 : i32
    %2 = arith.minsi %1, %c0_i32 : i32
    %c0_i32_0 = arith.constant 0 : i32
    %c0_i32_1 = arith.constant 0 : i32
    return %2, %c0_i32_0 : i32, i32
  }
  func.func @transform_1(%arg0: i32, %arg1: i32) -> (i32, i32) {
    %c1_i32 = arith.constant 1 : i32
    %0 = arith.muli %arg0, %c1_i32 : i32
    %1 = arith.addi %0, %arg1 : i32
    %c0_i32 = arith.constant 0 : i32
    %2 = arith.minsi %1, %c0_i32 : i32
    %c0_i32_0 = arith.constant 0 : i32
    %c0_i32_1 = arith.constant 0 : i32
    return %2, %c0_i32_0 : i32, i32
  }
  func.func @transform_2(%arg0: i32, %arg1: i32) -> (i32, i32) {
    %c0_i32 = arith.constant 0 : i32
    %c0_i32_0 = arith.constant 0 : i32
    return %arg0, %c0_i32 : i32, i32
  }
}

</mosaic_0001>

<bundles_post_ra>
// kernel: tpu_custom_call.1
= control target key start
LH: loop header
LB: loop body
LE: loop exit
PB: predicated region body
PF: predicated region fallthrough
CT: control target
= control target key end

     0   :  { %7 = vsyncpa [#allocation4], 0  ;;  %s379_s0 = inlined_call_operand.hbm [shape: f32[4,512], index: 0, kind: input, shape index: {}]   ;;  %s380_s1 = inlined_call_operand.hbm [shape: f32[4,512], index: 1, kind: input, shape index: {}]   ;;  %s381_s2 = inlined_call_operand.hbm [shape: f32[1,1], index: 2, kind: output, shape index: {}]  }
   0x1   :  { %8 = vsyncpa [#allocation7], 0 }
   0x2   :  { %9 = vsyncpa [#allocation5], 0  ;;  %s324_s9 = smov [#allocation3]   ;;  %s325_s11 = smov [#allocation6]  }
   0x3   :  { %s22_s10 = sshll.u32 %s324_s9, 4  ;;  %s38_s12 = sshll.u32 %s325_s11, 4  ;;  %s23_s10 = int_to_ptr.vmem [resolvable:$true] %s22_s10  ;;  %s39_s12 = int_to_ptr.vmem [resolvable:$true] %s38_s12 }
   0x4   :  { %s264_s15 = scalar_lea.hbm %s379_s0, 256 }
   0x5   :  { %p265_p0 = scmp.ne.s32.totalorder %s379_s0, %s264_s15  ;;  %p268_p1 = scmp.lt.u32.totalorder %s264_s15, %s379_s0 }
   0x7   :  { %p270_p2 = pnand %p268_p1, %p265_p0 }
   0x9   :  { %273 = shalt.err (!%p270_p2)
}
   0xa   :  { %s274_s20 = scalar_lea.vmem %s23_s10, 256  ;;  %p279_p4 = scmp.lt.s32.totalorder %s23_s10, %s23_s10 }
   0xb   :  { %p275_p3 = scmp.ne.s32.totalorder %s23_s10, %s274_s20  ;;  %p280_p5 = scmp.lt.s32.totalorder %s274_s20, %s274_s20 }
   0xd   :  { %p281_p6 = por %p280_p5, %p279_p4 }
   0xf   :  { %p282_p7 = pnand %p281_p6, %p275_p3 }
  0x11   :  { %285 = shalt.err (!%p282_p7)
}
  0x12   :  { %25 = dma.hbm_to_vmem [thread:$0]  %s379_s0, 256, %s23_s10, [#allocation4]  }
  0x13   :  { %s286_s25 = scalar_lea.hbm %s380_s1, 256 }
  0x14   :  { %p287_p8 = scmp.ne.s32.totalorder %s380_s1, %s286_s25  ;;  %p290_p9 = scmp.lt.u32.totalorder %s286_s25, %s380_s1 }
  0x16   :  { %p292_p10 = pnand %p290_p9, %p287_p8 }
  0x18   :  { %295 = shalt.err (!%p292_p10)
}
  0x19   :  { %s296_s30 = scalar_lea.vmem %s39_s12, 256  ;;  %p301_p12 = scmp.lt.s32.totalorder %s39_s12, %s39_s12 }
  0x1a   :  { %p297_p11 = scmp.ne.s32.totalorder %s39_s12, %s296_s30  ;;  %p302_p13 = scmp.lt.s32.totalorder %s296_s30, %s296_s30 }
  0x1c   :  { %p303_p0 = por %p302_p13, %p301_p12 }
  0x1e   :  { %p304_p1 = pnand %p303_p0, %p297_p11 }
  0x20   :  { %307 = shalt.err (!%p304_p1)
}
  0x21   :  { %41 = dma.hbm_to_vmem [thread:$0]  %s380_s1, 256, %s39_s12, [#allocation7]  }
  0x22   :  { %318 = dma.done.wait [#allocation4], 256  }
  0x23   :  { %319 = vsyncadd [#allocation4], 4294967040 }
  0x24   :  { %320 = dma.done.wait [#allocation7], 256  }
  0x25   :  { %321 = vsyncadd [#allocation7], 4294967040  ;;  %v54_v0 = vld [vmem:[#allocation3] sm:$0xff]  ;;  %v55_v1 = vld [vmem:[#allocation3 + $0x8] sm:$0xff]  ;;  %vm84_vm4 = vcmask 1043456   ;;  %v126_v36 = vlaneseq  ;;  %vm216_vm6 = vcmask 1040384  }
  0x26   :  { %v56_v2 = vld [vmem:[#allocation6] sm:$0xff]  ;;  %v57_v3 = vld [vmem:[#allocation6 + $0x8] sm:$0xff]  ;;  %v326_v34 = vmov 1966171168   ;;  %s308_s6 = scalar_lea.hbm %s381_s2, 16 }
  0x27   :  { %v58_v4 = vsub.f32 %v54_v0, %v56_v2  ;;  %v59_v5 = vsub.f32 %v55_v1, %v57_v3  ;;  %v124_v35 = vunpack.c.l.s4 %v326_v34  ;;  %v127_v46 = vshrl.u32 %v126_v36, 7  ;;  %p309_p2 = scmp.ne.s32.totalorder %s381_s2, %s308_s6  ;;  %p312_p3 = scmp.lt.u32.totalorder %s308_s6, %s381_s2 }
  0x28   :  { %vm148_vm5 = vcmp.lt.s32.totalorder %v126_v36, 512 }
  0x29   :  { %v60_v6 = vmul.f32 %v58_v4, %v58_v4  ;;  %v61_v7 = vmul.f32 %v59_v5, %v59_v5  ;;  %v125_v45 = vunpack.c.0.s8 %v124_v35  ;;  %v198_v62 = vsub.s32 0, %v127_v46  ;;  %p314_p4 = pnand %p312_p3, %p309_p2 }
  0x2a   :  { %v202_v63 = vsub.s32 1, %v127_v46  ;;  %v206_v0 = vsub.s32 2, %v127_v46  ;;  %v210_v1 = vsub.s32 3, %v127_v46 }
  0x2b   :  { %v62_v8 = vadd.f32 1e-06, %v60_v6  ;;  %v63_v9 = vadd.f32 1e-06, %v61_v7  ;;  %v128_v54 = vsub.s32 %v125_v45, %v127_v46 }
  0x2d   :  { %260 = vrsqrt.f32 %v62_v8  ;;  %vm66_vm0 = vcmp.eq.f32.partialorder %v62_v8, inf  ;;  %v69_v11 = vand.u32 2147483648, %v62_v8  ;;  %vm68_vm1 = vcmp.eq.f32.partialorder %v62_v8, 0.0 }
  0x2e   :  { %262 = vrsqrt.f32 %v63_v9  ;;  %vm73_vm2 = vcmp.eq.f32.partialorder %v63_v9, inf  ;;  %v76_v14 = vand.u32 2147483648, %v63_v9  ;;  %vm75_vm3 = vcmp.eq.f32.partialorder %v63_v9, 0.0 }
  0x37   :  { %v261_v10 = vpop.eup %260 }
  0x38   :  { %v263_v12 = vpop.eup %262  ;;  %v65_v13 = vmul.f32 %v261_v10, %v62_v8 }
  0x39   :  { %v72_v15 = vmul.f32 %v263_v12, %v63_v9 }
  0x3a   :  { %v67_v16 = vsel %vm66_vm0, %v62_v8, %v65_v13 }
  0x3b   :  { %v70_v17 = vsel %vm68_vm1, %v69_v11, %v67_v16  ;;  %v74_v18 = vsel %vm73_vm2, %v63_v9, %v72_v15 }
  0x3c   :  { %v77_v19 = vsel %vm75_vm3, %v76_v14, %v74_v18  ;;  %v80_v20 = vcombine.high %v70_v17, %v70_v17  ;;  %v85_v21 = vsel %vm84_vm4, %v70_v17, 0.0 }
  0x3d   :  { %v81_v22 = vcombine.high %v77_v19, %v77_v19  ;;  %v86_v23 = vrot.slane %v85_v21, 4  ;;  %v99_v24 = vsel %vm84_vm4, %v77_v19, 0.0 }
  0x3e   :  { %v92_v25 = vsel %vm84_vm4, %v80_v20, 0.0  ;;  %v100_v26 = vrot.slane %v99_v24, 4 }
  0x3f   :  { %v87_v27 = vadd.f32 %v86_v23, %v85_v21  ;;  %v93_v28 = vrot.slane %v92_v25, 4  ;;  %v106_v29 = vsel %vm84_vm4, %v81_v22, 0.0 }
  0x40   :  { %v101_v30 = vadd.f32 %v100_v26, %v99_v24  ;;  %v107_v31 = vrot.slane %v106_v29, 4 }
  0x41   :  { %v88_v32 = vrot.slane %v87_v27, 2  ;;  %v94_v33 = vadd.f32 %v93_v28, %v92_v25 }
  0x42   :  { %v102_v37 = vrot.slane %v101_v30, 2  ;;  %v108_v38 = vadd.f32 %v107_v31, %v106_v29 }
  0x43   :  { %v89_v39 = vadd.f32 %v88_v32, %v87_v27  ;;  %v95_v40 = vrot.slane %v94_v33, 2 }
  0x44   :  { %v103_v41 = vadd.f32 %v102_v37, %v101_v30  ;;  %v109_v42 = vrot.slane %v108_v38, 2 }
  0x45   :  { %v90_v43 = vrot.slane %v89_v39, 1  ;;  %v96_v44 = vadd.f32 %v95_v40, %v94_v33 }
  0x46   :  { %v104_v47 = vrot.slane %v103_v41, 1  ;;  %v110_v48 = vadd.f32 %v109_v42, %v108_v38 }
  0x47   :  { %v91_v49 = vadd.f32 %v90_v43, %v89_v39  ;;  %v97_v50 = vrot.slane %v96_v44, 1 }
  0x48   :  { %v105_v51 = vadd.f32 %v104_v47, %v103_v41  ;;  %v111_v52 = vrot.slane %v110_v48, 1 }
  0x49   :  { %v98_v53 = vadd.f32 %v97_v50, %v96_v44 }
  0x4a   :  { %v112_v55 = vadd.f32 %v111_v52, %v110_v48 }
  0x4b   :  { %v121_v56 = vcombine.low %v91_v49, %v98_v53 }
  0x4c   :  { %v122_v57 = vcombine.low %v105_v51, %v112_v55 }
  0x4d   :  { %v129_v58 = vrot.slane %v121_v56, %v128_v54 }
  0x4e   :  { %v136_v59 = vrot.slane %v122_v57, %v128_v54 }
  0x50   :  { %v137_v60 = vcombine.low %v129_v58, %v136_v59 }
  0x52   :  { %v144_v61 = vrot.slane %v137_v60, %v128_v54 }
  0x54   :  { %150 = vst.msk [vmem:[#allocation2] sm:$0xf] %vm148_vm5, %v144_v61 }
  0x5b   :  { %v194_v2 = vld [vmem:[#allocation2] sm:$0xf] }
  0x5c   :  { %v199_v3 = vrot.slane %v194_v2, %v198_v62  ;;  %v203_v4 = vrot.slane %v194_v2, %v202_v63  ;;  %v207_v5 = vrot.slane %v194_v2, %v206_v0  ;;  %v211_v6 = vrot.slane %v194_v2, %v210_v1 }
  0x5e   :  { %v217_v7 = vsel %vm216_vm6, %v199_v3, 0.0  ;;  %v218_v8 = vsel %vm216_vm6, %v203_v4, 0.0  ;;  %v220_v9 = vsel %vm216_vm6, %v207_v5, 0.0  ;;  %v222_v11 = vsel %vm216_vm6, %v211_v6, 0.0 }
  0x5f   :  { %v219_v10 = vadd.f32 %v218_v8, %v217_v7 }
  0x61   :  { %v221_v12 = vadd.f32 %v220_v9, %v219_v10 }
  0x63   :  { %v223_v13 = vadd.f32 %v222_v11, %v221_v12 }
  0x65   :  { %224 = vadd.xlane.f32.xlu0 %v223_v13 }
  0xf2   :  { %v225_v14 = vpop.xlane.xlu0 %224 }
  0xf3   :  { %v226_v15 = vrot.slane %v225_v14, 4 }
  0xf5   :  { %v227_v16 = vadd.f32 %v226_v15, %v225_v14 }
  0xf7   :  { %v228_v17 = vrot.slane %v227_v16, 2 }
  0xf9   :  { %v229_v18 = vadd.f32 %v228_v17, %v227_v16 }
  0xfb   :  { %v230_v19 = vrot.slane %v229_v18, 1 }
  0xfd   :  { %v231_v20 = vadd.f32 %v230_v19, %v229_v18 }
  0xff   :  { %254 = vpush %v231_v20 }
 0x130   :  { %s255_s1 = spop %254 }
 0x131   :  { %234 = sst [smem:[#allocation8]] %s255_s1 }
 0x132   :  { %317 = shalt.err (!%p314_p4)
}
 0x133   :  { %s327_s11 = smov [#allocation8]  }
 0x134   :  { %242 = dma.smem_to_hbm %s327_s11, 16, %s381_s2, [#allocation5]  }
 0x135   :  { %322 = dma.done.wait [#allocation5], 16  }
 0x136   :  { %323 = vsyncadd [#allocation5], 4294967280 }
 0x137   :  { %246 = sfence }
 0x138   :  { %247 = vsyncpa [#allocation4], 1 }
 0x139   :  { %248 = vsyncpa [#allocation7], 1 }
 0x13a   :  { %249 = vsyncpa [#allocation5], 1 }

</bundles_post_ra>
